<compile_context>
chip_gen: v7x
topology: tpu7x:2x2x1
jax: 0.10.0
libtpu: 0.0.40
codegen_flags: <defaults>
</compile_context>

<pallas_src>
import jax
import jax.numpy as jnp
from jax.experimental import pallas as pl
from jax.experimental.pallas import tpu as pltpu

LANES = 128  # vreg lane width


def trpe_copy_kernel(w_ref, out_ref):
    # Identity gather (TDist == arange(t_size)) => output row i == table row i.
    # Pure VMEM memcpy: no MXU, no index math, no masked stores.
    out_ref[...] = w_ref[...]


def _pick_row_tile(rows, lanes, itemsize):
    """Row tile for the lane-dense copy.

    - Block bytes capped at 1 MiB => double-buffered in+out footprint <= 4 MiB,
      safe under v5e's 16 MiB scoped-VMEM default and v7x's 32/64 MiB.
    - Tile is a multiple of 8 sublanes; the grid uses pl.cdiv so a partial
      last block is fine (no single-full-array fallback that could OOM VMEM).
    - Tables needing more than one block get at least 2 grid steps so the
      "parallel" grid axis shards the copy across v7x's two TensorCores.
    """
    MAX_BLOCK_BYTES = 1 << 20
    row_bytes = lanes * itemsize
    if rows * row_bytes <= MAX_BLOCK_BYTES:
        return rows  # tiny table: one block == full array, always VMEM-safe
    budget_rows = max(8, (MAX_BLOCK_BYTES // row_bytes) // 8 * 8)
    half_rows = max(8, ((rows + 1) // 2 + 7) // 8 * 8)  # forces >= 2 grid steps
    return min(budget_rows, half_rows)


def trpe_forward(weight):
    """weight: (t_size, d) f32 -> (t_size, 1, d) f32.

    Equivalent to nn.Embedding(t_size, d)(arange(t_size)[:, None]).
    NOTE: in production, prefer `weight[:, None, :]` (the gather is an
    identity) or fuse the broadcast-add into the consumer; the Pallas copy
    below exists to keep an explicit, VMEM-safe kernel for this exercise.
    """
    t_size, d = weight.shape
    total = t_size * d
    itemsize = weight.dtype.itemsize

    # Lane-dense view of the whole table: flatten, pad to a multiple of the
    # 128-lane vreg width when needed, and present the copy as (rows, 128) so
    # every store is an unmasked full-lane vst (never masked vst.msk).
    flat = weight.reshape(total)
    padded_total = pl.cdiv(total, LANES) * LANES
    if padded_total != total:
        flat = jnp.pad(flat, (0, padded_total - total))
    rows = padded_total // LANES
    w2 = flat.reshape(rows, LANES)

    tile_r = _pick_row_tile(rows, LANES, itemsize)
    grid = (pl.cdiv(rows, tile_r),)

    out2d = pl.pallas_call(
        trpe_copy_kernel,
        out_shape=jax.ShapeDtypeStruct((rows, LANES), weight.dtype),
        grid=grid,
        in_specs=[pl.BlockSpec((tile_r, LANES), lambda i: (i, 0))],
        out_specs=pl.BlockSpec((tile_r, LANES), lambda i: (i, 0)),
        compiler_params=pltpu.CompilerParams(
            dimension_semantics=("parallel",)),
        cost_estimate=pl.CostEstimate(
            flops=0,
            transcendentals=0,
            bytes_accessed=2 * padded_total * itemsize),
    )(w2)

    # Undo padding and match the PyTorch output shape (t_size, 1, d).
    out_flat = out2d.reshape(padded_total)
    if padded_total != total:
        out_flat = out_flat[:total]
    return out_flat.reshape(t_size, 1, d)


class TRPEPallas:
    """Mirrors TRPE.__init__/forward with deterministic in-script parameters."""

    def __init__(self, t_size, d, key):
        self.t_size = t_size
        self.d = d
        # TDist = expand_dims(range(t_size), -1); kept only for the reference
        # check -- the forward exploits that it is exactly arange(t_size).
        self.tdist = jnp.arange(t_size, dtype=jnp.int32)
        # nn.Embedding(t_size, d) weight, deterministic synthetic init.
        self.weight = jax.random.normal(key, (t_size, d), dtype=jnp.float32)

    def __call__(self):
        return trpe_forward(self.weight)


if __name__ == "__main__":
    t_size, d = 8, 32
    key = jax.random.PRNGKey(0)

    module = TRPEPallas(t_size, d, key)
    out = jax.block_until_ready(module())

    # Reference in plain JAX: embedding gather with the module's TDist.
    ref = jnp.take(module.weight, module.tdist, axis=0).reshape(t_size, 1, d)
    assert out.shape == (t_size, 1, d), out.shape
    assert out.dtype == jnp.float32
    assert bool(jnp.array_equal(out, ref)), "mismatch vs reference"

    print("KERNEL_OK")
</pallas_src>

<mosaic_0001>
module attributes {stable_mosaic.version = 11 : i64} {
  func.func @trpe_copy_kernel(%arg0: i32, %arg1: memref<2x128xf32, #tpu.memory_space<vmem>>, %arg2: memref<2x128xf32, #tpu.memory_space<vmem>>) attributes {dimension_semantics = [#tpu.dimension_semantics<parallel>], iteration_bounds = array<i64: 1>, scalar_prefetch = 0 : i64, scratch_operands = 0 : i64, tpu.core_type = #tpu.core_type<tc>, window_params = [{transform_indices = @transform_0, window_bounds = array<i64: 2, 128>}, {transform_indices = @transform_1, window_bounds = array<i64: 2, 128>}]} {
    %c0 = arith.constant 0 : index
    %c0_0 = arith.constant 0 : index
    %0 = vector.load %arg1[%c0, %c0_0] : memref<2x128xf32, #tpu.memory_space<vmem>>, vector<2x128xf32>
    %c0_1 = arith.constant 0 : index
    %c0_2 = arith.constant 0 : index
    %1 = vector.load %arg2[%c0_1, %c0_2] : memref<2x128xf32, #tpu.memory_space<vmem>>, vector<2x128xf32>
    tpu.vector_store %arg2[%c0_1, %c0_2], %0 {strides = array<i32>} : memref<2x128xf32, #tpu.memory_space<vmem>>, vector<2x128xf32>,
    return
  }
  func.func @transform_0(%arg0: i32) -> (i32, i32) {
    %c0_i32 = arith.constant 0 : i32
    %c0_i32_0 = arith.constant 0 : i32
    return %arg0, %c0_i32 : i32, i32
  }
  func.func @transform_1(%arg0: i32) -> (i32, i32) {
    %c0_i32 = arith.constant 0 : i32
    %c0_i32_0 = arith.constant 0 : i32
    return %arg0, %c0_i32 : i32, i32
  }
}

</mosaic_0001>

<bundles_post_ra>
// kernel: tpu_custom_call.1
= control target key start
LH: loop header
LB: loop body
LE: loop exit
PB: predicated region body
PF: predicated region fallthrough
CT: control target
= control target key end

     0   :  { %6 = vsyncpa [#allocation3], 0  ;;  %s124_s0 = inlined_call_operand.hbm [shape: f32[2,128], index: 0, kind: input, shape index: {}]   ;;  %s125_s1 = inlined_call_operand.hbm [shape: f32[2,128], index: 1, kind: output, shape index: {}]  }
   0x1   :  { %7 = vsyncpa [#allocation4], 0  ;;  %s88_s6 = smov [#allocation2]   ;;  %s40_s10 = scalar_lea.hbm %s124_s0, 32 }
   0x2   :  { %s14_s7 = sshll.u32 %s88_s6, 4  ;;  %p41_p0 = scmp.ne.s32.totalorder %s124_s0, %s40_s10  ;;  %s15_s7 = int_to_ptr.vmem [resolvable:$true] %s14_s7 }
   0x3   :  { %p44_p1 = scmp.lt.u32.totalorder %s40_s10, %s124_s0 }
   0x5   :  { %p46_p2 = pnand %p44_p1, %p41_p0 }
   0x7   :  { %49 = shalt.err (!%p46_p2)
}
   0x8   :  { %s50_s15 = scalar_lea.vmem %s15_s7, 32  ;;  %p55_p4 = scmp.lt.s32.totalorder %s15_s7, %s15_s7 }
   0x9   :  { %p51_p3 = scmp.ne.s32.totalorder %s15_s7, %s50_s15  ;;  %p56_p5 = scmp.lt.s32.totalorder %s50_s15, %s50_s15 }
   0xb   :  { %p57_p6 = por %p56_p5, %p55_p4 }
   0xd   :  { %p58_p7 = pnand %p57_p6, %p51_p3 }
   0xf   :  { %61 = shalt.err (!%p58_p7)
}
  0x10   :  { %17 = dma.hbm_to_vmem [thread:$0]  %s124_s0, 32, %s15_s7, [#allocation3]  }
  0x11   :  { %84 = dma.done.wait [#allocation3], 32  }
  0x12   :  { %85 = vsyncadd [#allocation3], 4294967264  ;;  %s89_s18 = smov [#allocation5]   ;;  %v21_v0 = vld [vmem:[#allocation2] sm:$0x3] }
  0x13   :  { %s29_s19 = sshll.u32 %s89_s18, 4  ;;  %22 = vst [vmem:[#allocation5] sm:$0x3] %v21_v0  ;;  %s30_s19 = int_to_ptr.vmem [resolvable:$true] %s29_s19 }
  0x14   :  { %s62_s20 = scalar_lea.vmem %s30_s19, 32  ;;  %p67_p9 = scmp.lt.s32.totalorder %s30_s19, %s30_s19 }
  0x15   :  { %p63_p8 = scmp.ne.s32.totalorder %s30_s19, %s62_s20  ;;  %p68_p10 = scmp.lt.s32.totalorder %s62_s20, %s62_s20 }
  0x17   :  { %p69_p11 = por %p68_p10, %p67_p9 }
  0x19   :  { %p70_p12 = pnand %p69_p11, %p63_p8 }
  0x1b   :  { %73 = shalt.err (!%p70_p12)
}
  0x1c   :  { %s74_s23 = scalar_lea.hbm %s125_s1, 32 }
  0x1d   :  { %p75_p13 = scmp.ne.s32.totalorder %s125_s1, %s74_s23  ;;  %p78_p0 = scmp.lt.u32.totalorder %s74_s23, %s125_s1 }
  0x1f   :  { %p80_p1 = pnand %p78_p0, %p75_p13 }
  0x21   :  { %83 = shalt.err (!%p80_p1)
}
  0x22   :  { %32 = dma.vmem_to_hbm [thread:$0]  %s30_s19, 32, %s125_s1, [#allocation4]  }
  0x23   :  { %86 = dma.done.wait [#allocation4], 32  }
  0x24   :  { %87 = vsyncadd [#allocation4], 4294967264 }
  0x25   :  { %36 = vsyncpa [#allocation3], 1 }
  0x26   :  { %37 = vsyncpa [#allocation4], 1 }

</bundles_post_ra>
